<compile_context>
chip_gen: v7x
topology: tpu7x:2x2x1
jax: 0.10.0
libtpu: 0.0.40
codegen_flags: <defaults>
</compile_context>

<pallas_src>
import functools

import jax
import jax.numpy as jnp
from jax import lax
from jax.experimental import pallas as pl
from jax.experimental.pallas import tpu as pltpu


_LANE = 128


def _round_up(x, m):
    return (x + m - 1) // m * m


def _hw_params():
    """Per-generation VMEM / block sizing (v7x: 64 MiB VMEM + 2 TensorCores)."""
    kind = ""
    try:
        kind = jax.devices()[0].device_kind.lower()
    except Exception:
        pass
    if "v7" in kind:
        return dict(vmem_limit=48 << 20, block_budget=4 << 20,
                    fused_slab_max=10 << 20, num_tc=2)
    # v5e / v6e (128 MiB physical VMEM, single TensorCore) and fallback.
    return dict(vmem_limit=96 << 20, block_budget=8 << 20,
                fused_slab_max=20 << 20, num_tc=1)


# ---------------------------------------------------------------------------
# Fused single-pass kernel (4-D path)
# ---------------------------------------------------------------------------
def _fused_kernel(x_ref, w1t_ref, w2t_ref, y_ref, *, bt, s_true):
    # x_ref: (bt, C, S) in input dtype; w1t: (C, Hd) = W1^T; w2t: (Hd, C) = W2^T
    x = x_ref[...]

    sums = jnp.sum(x, axis=-1, dtype=jnp.float32)            # (bt, C), f32 accum
    mx = jnp.max(x, axis=-1).astype(jnp.float32)             # (bt, C)
    avg = sums * (1.0 / s_true)

    # One fused MLP for both pooled vectors: (2*bt, C) @ (C, Hd) -> relu -> (Hd, C)
    pooled = jnp.concatenate([avg, mx], axis=0)              # (2*bt, C)
    h = jnp.maximum(
        jnp.dot(pooled, w1t_ref[...], preferred_element_type=jnp.float32), 0.0)
    out = jnp.dot(h, w2t_ref[...], preferred_element_type=jnp.float32)  # (2*bt, C)
    scale = jax.nn.sigmoid(out[:bt] + out[bt:])               # (bt, C) f32

    # Multiply in f32 (scale is not quantized); cast only on the final store.
    y_ref[...] = (x.astype(jnp.float32) * scale[:, :, None]).astype(y_ref.dtype)


def _run_fused(x_bcs, w1t, w2t, out_dtype, hw):
    B, C, S = x_bcs.shape
    Hd = w1t.shape[1]
    in_bytes = jnp.dtype(x_bcs.dtype).itemsize
    out_bytes = jnp.dtype(out_dtype).itemsize
    slab = C * S * max(in_bytes, out_bytes)

    # Fill the block budget with as many batch items as fit (no B//8 cap).
    bt = max(1, min(B, hw["block_budget"] // max(slab, 1)))
    if hw["num_tc"] >= 2 and B >= 2:
        bt = min(bt, -(-B // 2))      # guarantee >= 2 parallel steps for dual-TC
    if bt >= 8:
        bt = bt // 8 * 8              # keep (8,128) sublane-tile aligned slices
    grid_b = pl.cdiv(B, bt)

    kernel = functools.partial(_fused_kernel, bt=bt, s_true=S)
    cost = pl.CostEstimate(
        flops=8 * B * C * Hd + 4 * B * C * S,
        transcendentals=B * C,
        bytes_accessed=B * C * S * (in_bytes + out_bytes) + 2 * C * Hd * 4,
    )
    return pl.pallas_call(
        kernel,
        out_shape=jax.ShapeDtypeStruct((B, C, S), out_dtype),
        grid_spec=pltpu.PrefetchScalarGridSpec(
            num_scalar_prefetch=0,
            grid=(grid_b,),
            in_specs=[
                # Full-extent C and S dims: exempt from the (8,128) rule, so
                # ragged S needs no wrapper pad / slice (no extra HBM passes).
                pl.BlockSpec((bt, C, S), lambda b: (b, 0, 0)),
                pl.BlockSpec((C, Hd), lambda b: (0, 0)),
                pl.BlockSpec((Hd, C), lambda b: (0, 0)),
            ],
            out_specs=pl.BlockSpec((bt, C, S), lambda b: (b, 0, 0)),
        ),
        compiler_params=pltpu.CompilerParams(
            dimension_semantics=("parallel",),
            vmem_limit_bytes=hw["vmem_limit"]),
        cost_estimate=cost,
    )(x_bcs, w1t, w2t)


# ---------------------------------------------------------------------------
# Two-pass path (4-D, large slabs): S-tiled pooling kernel + scale-apply kernel
# ---------------------------------------------------------------------------
def _pool_scale_kernel(x_ref, w1_ref, w2_ref, scale_ref, sum_sc, max_sc, *,
                       s_true, st, ragged):
    # grid = (B, n_s_tiles); x_ref: (1, C, st); scale_ref: (1, C, 1)
    si = pl.program_id(1)
    n_si = pl.num_programs(1)

    @pl.when(si == 0)
    def _():
        sum_sc[...] = jnp.zeros_like(sum_sc)
        max_sc[...] = jnp.full_like(max_sc, -jnp.inf)

    x = x_ref[0]                                              # (C, st)

    def _accum(xv):
        sum_sc[...] += jnp.sum(xv, axis=-1, keepdims=True, dtype=jnp.float32)
        max_sc[...] = jnp.maximum(
            max_sc[...],
            jnp.max(xv, axis=-1, keepdims=True).astype(jnp.float32))

    if ragged:
        # Only the last S tile extends past the true extent: mask only there.
        @pl.when(si < n_si - 1)
        def _():
            _accum(x)

        @pl.when(si == n_si - 1)
        def _():
            lane = lax.broadcasted_iota(jnp.int32, x.shape, 1)
            valid = lane < (s_true - si * st)
            neg = jnp.asarray(jnp.finfo(x.dtype).min, x.dtype)
            zero = jnp.asarray(0, x.dtype)
            sum_sc[...] += jnp.sum(jnp.where(valid, x, zero), axis=-1,
                                   keepdims=True, dtype=jnp.float32)
            max_sc[...] = jnp.maximum(
                max_sc[...],
                jnp.max(jnp.where(valid, x, neg), axis=-1,
                        keepdims=True).astype(jnp.float32))
    else:
        _accum(x)

    @pl.when(si == n_si - 1)
    def _():
        avg = sum_sc[...] * (1.0 / s_true)                    # (C, 1)
        pooled = jnp.concatenate([avg, max_sc[...]], axis=1)  # (C, 2)
        h = jnp.maximum(jnp.dot(w1_ref[...], pooled,
                                preferred_element_type=jnp.float32), 0.0)   # (Hd, 2)
        out = jnp.dot(w2_ref[...], h, preferred_element_type=jnp.float32)   # (C, 2)
        scale_ref[0] = jax.nn.sigmoid(out[:, 0:1] + out[:, 1:2])            # (C, 1)


def _apply_kernel(x_ref, scale_ref, y_ref):
    # x_ref: (1, C, st); scale_ref: (1, C, 1) f32 -> broadcast over lanes.
    y_ref[...] = (x_ref[...].astype(jnp.float32) * scale_ref[...]).astype(y_ref.dtype)


def _run_two_pass(x_bcs, w1, w2, out_dtype, hw, st=None):
    B, C, S = x_bcs.shape
    Hd = w1.shape[0]
    in_bytes = jnp.dtype(x_bcs.dtype).itemsize
    out_bytes = jnp.dtype(out_dtype).itemsize

    if st is None:
        st = (hw["block_budget"] // max(C * max(in_bytes, out_bytes), 1)) // _LANE * _LANE
        st = max(st, _LANE)
    else:
        st = max(_LANE, _round_up(st, _LANE))
    if st >= S:
        st = S                                                # single full-extent tile
    n_s = pl.cdiv(S, st)
    ragged = (S % st) != 0

    pool = functools.partial(_pool_scale_kernel, s_true=S, st=st, ragged=ragged)
    scale = pl.pallas_call(
        pool,
        out_shape=jax.ShapeDtypeStruct((B, C, 1), jnp.float32),
        grid_spec=pltpu.PrefetchScalarGridSpec(
            num_scalar_prefetch=0,
            grid=(B, n_s),
            in_specs=[
                pl.BlockSpec((1, C, st), lambda b, s: (b, 0, s)),
                pl.BlockSpec((Hd, C), lambda b, s: (0, 0)),
                pl.BlockSpec((C, Hd), lambda b, s: (0, 0)),
            ],
            out_specs=pl.BlockSpec((1, C, 1), lambda b, s: (b, 0, 0)),
            scratch_shapes=[pltpu.VMEM((C, 1), jnp.float32),
                            pltpu.VMEM((C, 1), jnp.float32)],
        ),
        compiler_params=pltpu.CompilerParams(
            dimension_semantics=("parallel", "arbitrary"),
            vmem_limit_bytes=hw["vmem_limit"]),
        cost_estimate=pl.CostEstimate(
            flops=2 * B * C * S + 8 * B * C * Hd, transcendentals=B * C,
            bytes_accessed=B * C * S * in_bytes + B * C * 4),
    )(x_bcs, w1, w2)

    y = pl.pallas_call(
        _apply_kernel,
        out_shape=jax.ShapeDtypeStruct((B, C, S), out_dtype),
        grid_spec=pltpu.PrefetchScalarGridSpec(
            num_scalar_prefetch=0,
            grid=(B, n_s),
            in_specs=[
                pl.BlockSpec((1, C, st), lambda b, s: (b, 0, s)),
                pl.BlockSpec((1, C, 1), lambda b, s: (b, 0, 0)),
            ],
            out_specs=pl.BlockSpec((1, C, st), lambda b, s: (b, 0, s)),
        ),
        compiler_params=pltpu.CompilerParams(
            dimension_semantics=("parallel", "parallel"),
            vmem_limit_bytes=hw["vmem_limit"]),
        cost_estimate=pl.CostEstimate(
            flops=B * C * S, transcendentals=0,
            bytes_accessed=B * C * S * (in_bytes + out_bytes) + B * C * 4),
    )(x_bcs, scale)
    return y


# ---------------------------------------------------------------------------
# 2-D (N, C) path: tiled two-pass over N (pool + apply), C on lanes
# ---------------------------------------------------------------------------
def _rows_pool_kernel(x_ref, w1t_ref, w2t_ref, scale_ref, sum_sc, max_sc, *,
                      n_true, nt, ragged):
    i = pl.program_id(0)
    n_i = pl.num_programs(0)

    @pl.when(i == 0)
    def _():
        sum_sc[...] = jnp.zeros_like(sum_sc)
        max_sc[...] = jnp.full_like(max_sc, -jnp.inf)

    x = x_ref[...]                                            # (nt, C)

    def _accum(xv):
        sum_sc[...] += jnp.sum(xv, axis=0, keepdims=True, dtype=jnp.float32)
        max_sc[...] = jnp.maximum(
            max_sc[...],
            jnp.max(xv, axis=0, keepdims=True).astype(jnp.float32))

    if ragged:
        @pl.when(i < n_i - 1)
        def _():
            _accum(x)

        @pl.when(i == n_i - 1)
        def _():
            row = lax.broadcasted_iota(jnp.int32, x.shape, 0)
            valid = row < (n_true - i * nt)
            neg = jnp.asarray(jnp.finfo(x.dtype).min, x.dtype)
            zero = jnp.asarray(0, x.dtype)
            sum_sc[...] += jnp.sum(jnp.where(valid, x, zero), axis=0,
                                   keepdims=True, dtype=jnp.float32)
            max_sc[...] = jnp.maximum(
                max_sc[...],
                jnp.max(jnp.where(valid, x, neg), axis=0,
                        keepdims=True).astype(jnp.float32))
    else:
        _accum(x)

    @pl.when(i == n_i - 1)
    def _():
        avg = sum_sc[...] * (1.0 / n_true)                    # (1, C)
        pooled = jnp.concatenate([avg, max_sc[...]], axis=0)  # (2, C)
        h = jnp.maximum(jnp.dot(pooled, w1t_ref[...],
                                preferred_element_type=jnp.float32), 0.0)   # (2, Hd)
        out = jnp.dot(h, w2t_ref[...], preferred_element_type=jnp.float32)  # (2, C)
        scale_ref[...] = jax.nn.sigmoid(out[0:1] + out[1:2])                # (1, C)


def _rows_apply_kernel(x_ref, scale_ref, y_ref):
    y_ref[...] = (x_ref[...].astype(jnp.float32) * scale_ref[...]).astype(y_ref.dtype)


def _run_rows(x, w1t, w2t, out_dtype, hw, nt=None):
    N, C = x.shape
    Hd = w1t.shape[1]
    in_bytes = jnp.dtype(x.dtype).itemsize
    out_bytes = jnp.dtype(out_dtype).itemsize

    if nt is None:
        nt = hw["block_budget"] // max(C * max(in_bytes, out_bytes), 1)
        if hw["num_tc"] >= 2 and N >= 16:
            nt = min(nt, -(-N // 2))      # >= 2 grid steps for dual-TC chips
    nt = max(8, nt // 8 * 8)              # multiple of 8 sublanes when tiled
    nt = min(nt, _round_up(N, 8))
    if nt >= N:
        nt = N                            # full-extent block (exempt from rule)
    n_n = pl.cdiv(N, nt)
    ragged = (N % nt) != 0

    pool = functools.partial(_rows_pool_kernel, n_true=N, nt=nt, ragged=ragged)
    scale = pl.pallas_call(
        pool,
        out_shape=jax.ShapeDtypeStruct((1, C), jnp.float32),
        grid_spec=pltpu.PrefetchScalarGridSpec(
            num_scalar_prefetch=0,
            grid=(n_n,),
            in_specs=[
                pl.BlockSpec((nt, C), lambda i: (i, 0)),
                pl.BlockSpec((C, Hd), lambda i: (0, 0)),
                pl.BlockSpec((Hd, C), lambda i: (0, 0)),
            ],
            out_specs=pl.BlockSpec((1, C), lambda i: (0, 0)),
            scratch_shapes=[pltpu.VMEM((1, C), jnp.float32),
                            pltpu.VMEM((1, C), jnp.float32)],
        ),
        compiler_params=pltpu.CompilerParams(
            dimension_semantics=("arbitrary",),
            vmem_limit_bytes=hw["vmem_limit"]),
        cost_estimate=pl.CostEstimate(
            flops=2 * N * C + 8 * C * Hd, transcendentals=C,
            bytes_accessed=N * C * in_bytes + C * 4),
    )(x, w1t, w2t)

    y = pl.pallas_call(
        _rows_apply_kernel,
        out_shape=jax.ShapeDtypeStruct((N, C), out_dtype),
        grid_spec=pltpu.PrefetchScalarGridSpec(
            num_scalar_prefetch=0,
            grid=(n_n,),
            in_specs=[
                pl.BlockSpec((nt, C), lambda i: (i, 0)),
                pl.BlockSpec((1, C), lambda i: (0, 0)),
            ],
            out_specs=pl.BlockSpec((nt, C), lambda i: (i, 0)),
        ),
        compiler_params=pltpu.CompilerParams(
            dimension_semantics=("parallel",),
            vmem_limit_bytes=hw["vmem_limit"]),
        cost_estimate=pl.CostEstimate(
            flops=N * C, transcendentals=0,
            bytes_accessed=N * C * (in_bytes + out_bytes) + C * 4),
    )(x, scale)
    return y


# ---------------------------------------------------------------------------
# Dispatcher + module wrapper
# ---------------------------------------------------------------------------
def _channel_attention_4d(x, w1, w2, w1t, w2t, out_dtype, hw, *,
                          force_two_pass=False, spatial_tile=None):
    B, C, H, W = x.shape
    S = H * W
    itemsize = max(jnp.dtype(x.dtype).itemsize, jnp.dtype(out_dtype).itemsize)
    slab = C * S * itemsize
    # The two-pass path reads x twice (3 HBM passes vs 2): only take it when a
    # single-batch slab genuinely can't be resident with double buffering.
    use_two_pass = force_two_pass or (slab > hw["fused_slab_max"])

    x_bcs = x.reshape(B, C, S)
    if not use_two_pass:
        y = _run_fused(x_bcs, w1t, w2t, out_dtype, hw)
    else:
        y = _run_two_pass(x_bcs, w1, w2, out_dtype, hw, st=spatial_tile)
    return y.reshape(B, C, H, W)


class ChannelAttentionPallas:
    """Pallas port of xmuda.models.cbam.ChannelAttention (bias-free MLP)."""

    def __init__(self, in_channels, reduction_ratio=16, key=None):
        self.in_channels = in_channels
        hidden = max(1, in_channels // reduction_ratio)
        key = jax.random.PRNGKey(0) if key is None else key
        k1, k2 = jax.random.split(key)
        bound1 = 1.0 / (in_channels ** 0.5)
        bound2 = 1.0 / (hidden ** 0.5)
        # torch nn.Linear weight layout: (out_features, in_features)
        self.w1 = jax.random.uniform(k1, (hidden, in_channels), jnp.float32, -bound1, bound1)
        self.w2 = jax.random.uniform(k2, (in_channels, hidden), jnp.float32, -bound2, bound2)
        # Pre-transposed copies keep C / Hd on the lane axis (no in-kernel transpose).
        self.w1t = jnp.transpose(self.w1)    # (C, Hd)
        self.w2t = jnp.transpose(self.w2)    # (Hd, C)

    def __call__(self, x, *, force_two_pass=False, spatial_tile=None, row_tile=None):
        if not jnp.issubdtype(x.dtype, jnp.floating):
            # TODO(synk): integer inputs would need a f32 multiply + rounding path.
            raise NotImplementedError("ChannelAttentionPallas supports floating dtypes only")
        out_dtype = jnp.result_type(x.dtype, self.w1.dtype)
        hw = _hw_params()
        if x.ndim == 2:
            assert x.shape[1] == self.in_channels
            return _run_rows(x, self.w1t, self.w2t, out_dtype, hw, nt=row_tile)
        elif x.ndim == 4:
            assert x.shape[1] == self.in_channels
            return _channel_attention_4d(x, self.w1, self.w2, self.w1t, self.w2t,
                                         out_dtype, hw,
                                         force_two_pass=force_two_pass,
                                         spatial_tile=spatial_tile)
        else:
            raise NotImplementedError("Unsupported tensor shape for ChannelAttention")


def _reference(x, w1, w2):
    """Pure-JAX reproduction of the PyTorch forward for verification."""
    def mlp(v):
        return jnp.maximum(v @ w1.T, 0.0) @ w2.T
    if x.ndim == 4:
        avg = jnp.mean(x, axis=(2, 3))
        mx = jnp.max(x, axis=(2, 3))
        scale = jax.nn.sigmoid(mlp(avg) + mlp(mx))
        return x * scale[:, :, None, None]
    else:
        avg = jnp.mean(x, axis=0)
        mx = jnp.max(x, axis=0)
        scale = jax.nn.sigmoid(mlp(avg) + mlp(mx))
        return x * scale[None, :]


if __name__ == "__main__":
    key = jax.random.PRNGKey(0)
    k1, k2, k3, k4, k5, kp = jax.random.split(key, 6)

    C = 32
    module = ChannelAttentionPallas(C, reduction_ratio=16, key=kp)

    # 4-D fused single-pass path (S = 256, lane-dense).
    x4 = jax.random.normal(k1, (2, C, 16, 16), dtype=jnp.float32)
    y4 = jax.block_until_ready(module(x4))
    assert y4.shape == x4.shape and y4.dtype == x4.dtype
    assert jnp.allclose(y4, _reference(x4, module.w1, module.w2), atol=1e-5, rtol=1e-5)

    # 4-D fused path with ragged spatial extent (7x7 = 49 lanes, no pad/slice).
    x4r = jax.random.normal(k2, (2, C, 7, 7), dtype=jnp.float32)
    y4r = jax.block_until_ready(module(x4r))
    assert jnp.allclose(y4r, _reference(x4r, module.w1, module.w2), atol=1e-5, rtol=1e-5)

    # 4-D two-pass (pool + scale-apply), forced, S=1024 tiled into 4x256.
    x4l = jax.random.normal(k3, (2, C, 32, 32), dtype=jnp.float32)
    y4l = jax.block_until_ready(module(x4l, force_two_pass=True, spatial_tile=256))
    assert jnp.allclose(y4l, _reference(x4l, module.w1, module.w2), atol=1e-5, rtol=1e-5)

    # 4-D two-pass with a ragged last S tile (S=324 -> 2 full 128-tiles + tail).
    x4g = jax.random.normal(k4, (1, C, 18, 18), dtype=jnp.float32)
    y4g = jax.block_until_ready(module(x4g, force_two_pass=True, spatial_tile=128))
    assert jnp.allclose(y4g, _reference(x4g, module.w1, module.w2), atol=1e-5, rtol=1e-5)

    # 2-D (N, C) path, tiled over N with a ragged last row tile.
    x2 = jax.random.normal(k5, (50, C), dtype=jnp.float32)
    y2 = jax.block_until_ready(module(x2, row_tile=16))
    assert y2.shape == x2.shape and y2.dtype == x2.dtype
    assert jnp.allclose(y2, _reference(x2, module.w1, module.w2), atol=1e-5, rtol=1e-5)

    # 2-D path, single full-extent tile.
    x2b = jax.random.normal(k1, (64, C), dtype=jnp.float32)
    y2b = jax.block_until_ready(module(x2b))
    assert jnp.allclose(y2b, _reference(x2b, module.w1, module.w2), atol=1e-5, rtol=1e-5)

    print("KERNEL_OK")
</pallas_src>

<mosaic_0001>
module attributes {stable_mosaic.version = 11 : i64} {
  func.func @_fused_kernel(%arg0: i32, %arg1: memref<2x32x256xf32, #tpu.memory_space<vmem>>, %arg2: memref<32x2xf32, #tpu.memory_space<vmem>>, %arg3: memref<2x32xf32, #tpu.memory_space<vmem>>, %arg4: memref<2x32x256xf32, #tpu.memory_space<vmem>>) attributes {dimension_semantics = [#tpu.dimension_semantics<parallel>], iteration_bounds = array<i64: 1>, scalar_prefetch = 0 : i64, scratch_operands = 0 : i64, tpu.core_type = #tpu.core_type<tc>, window_params = [{transform_indices = @transform_0, window_bounds = array<i64: 2, 32, 256>}, {pipeline_mode = #tpu.pipeline_mode<synchronous>, transform_indices = @transform_1, window_bounds = array<i64: 32, 2>}, {pipeline_mode = #tpu.pipeline_mode<synchronous>, transform_indices = @transform_2, window_bounds = array<i64: 2, 32>}, {transform_indices = @transform_3, window_bounds = array<i64: 2, 32, 256>}]} {
    %c0 = arith.constant 0 : index
    %c0_0 = arith.constant 0 : index
    %c0_1 = arith.constant 0 : index
    %0 = vector.load %arg1[%c0, %c0_0, %c0_1] : memref<2x32x256xf32, #tpu.memory_space<vmem>>, vector<2x32x256xf32>
    %cst = arith.constant dense<0.000000e+00> : vector<2x32xf32>
    %1 = vector.multi_reduction <add>, %0, %cst [2] : vector<2x32x256xf32> to vector<2x32xf32>
    %cst_2 = arith.constant dense<0xFF800000> : vector<2x32xf32>
    %2 = vector.multi_reduction <maximumf>, %0, %cst_2 [2] : vector<2x32x256xf32> to vector<2x32xf32>
    %cst_3 = arith.constant 3.906250e-03 : f32
    %3 = vector.broadcast %cst_3 : f32 to vector<2x32xf32>
    %4 = arith.mulf %1, %3 : vector<2x32xf32>
    %5 = tpu.concatenate %4, %2 in 0 : vector<2x32xf32>, vector<2x32xf32> -> vector<4x32xf32>
    %c0_4 = arith.constant 0 : index
    %c0_5 = arith.constant 0 : index
    %6 = vector.load %arg2[%c0_4, %c0_5] : memref<32x2xf32, #tpu.memory_space<vmem>>, vector<32x2xf32>
    %cst_6 = arith.constant dense<0.000000e+00> : vector<4x2xf32>
    %7 = tpu.matmul %5, %6, %cst_6 {dimension_numbers = #tpu.dot_dimension_numbers<[1], [0], [0], [1], [0, 0, 1, 1], [], []>} : vector<4x32xf32>, vector<32x2xf32>, vector<4x2xf32> -> vector<4x2xf32>
    %cst_7 = arith.constant 0.000000e+00 : f32
    %8 = vector.broadcast %cst_7 : f32 to vector<4x2xf32>
    %9 = arith.maximumf %7, %8 : vector<4x2xf32>
    %c0_8 = arith.constant 0 : index
    %c0_9 = arith.constant 0 : index
    %10 = vector.load %arg3[%c0_8, %c0_9] : memref<2x32xf32, #tpu.memory_space<vmem>>, vector<2x32xf32>
    %cst_10 = arith.constant dense<0.000000e+00> : vector<4x32xf32>
    %11 = tpu.matmul %9, %10, %cst_10 {dimension_numbers = #tpu.dot_dimension_numbers<[1], [0], [0], [1], [0, 0, 1, 1], [], []>} : vector<4x2xf32>, vector<2x32xf32>, vector<4x32xf32> -> vector<4x32xf32>
    %12 = vector.extract_strided_slice %11 {offsets = [0, 0], sizes = [2, 32], strides = [1, 1]} : vector<4x32xf32> to vector<2x32xf32>
    %13 = vector.extract_strided_slice %11 {offsets = [2, 0], sizes = [2, 32], strides = [1, 1]} : vector<4x32xf32> to vector<2x32xf32>
    %14 = arith.addf %12, %13 : vector<2x32xf32>
    %15 = arith.negf %14 : vector<2x32xf32>
    %16 = math.exp %15 : vector<2x32xf32>
    %cst_11 = arith.constant 1.000000e+00 : f32
    %17 = vector.broadcast %cst_11 : f32 to vector<2x32xf32>
    %18 = arith.addf %17, %16 : vector<2x32xf32>
    %19 = arith.divf %17, %18 : vector<2x32xf32>
    %20 = vector.shape_cast %19 : vector<2x32xf32> to vector<2x32x1xf32>
    %21 = vector.broadcast %20 : vector<2x32x1xf32> to vector<2x32x256xf32>
    %22 = arith.mulf %0, %21 : vector<2x32x256xf32>
    %c0_12 = arith.constant 0 : index
    %c0_13 = arith.constant 0 : index
    %c0_14 = arith.constant 0 : index
    %23 = vector.load %arg4[%c0_12, %c0_13, %c0_14] : memref<2x32x256xf32, #tpu.memory_space<vmem>>, vector<2x32x256xf32>
    tpu.vector_store %arg4[%c0_12, %c0_13, %c0_14], %22 {strides = array<i32>} : memref<2x32x256xf32, #tpu.memory_space<vmem>>, vector<2x32x256xf32>,
    return
  }
  func.func @transform_0(%arg0: i32) -> (i32, i32, i32) {
    %c0_i32 = arith.constant 0 : i32
    %c0_i32_0 = arith.constant 0 : i32
    %c0_i32_1 = arith.constant 0 : i32
    return %arg0, %c0_i32, %c0_i32_0 : i32, i32, i32
  }
  func.func @transform_1(%arg0: i32) -> (i32, i32) {
    %c0_i32 = arith.constant 0 : i32
    %c0_i32_0 = arith.constant 0 : i32
    %c0_i32_1 = arith.constant 0 : i32
    return %c0_i32, %c0_i32_0 : i32, i32
  }
  func.func @transform_2(%arg0: i32) -> (i32, i32) {
    %c0_i32 = arith.constant 0 : i32
    %c0_i32_0 = arith.constant 0 : i32
    %c0_i32_1 = arith.constant 0 : i32
    return %c0_i32, %c0_i32_0 : i32, i32
  }
  func.func @transform_3(%arg0: i32) -> (i32, i32, i32) {
    %c0_i32 = arith.constant 0 : i32
    %c0_i32_0 = arith.constant 0 : i32
    %c0_i32_1 = arith.constant 0 : i32
    return %arg0, %c0_i32, %c0_i32_0 : i32, i32, i32
  }
}

</mosaic_0001>

<bundles_post_ra>
// kernel: tpu_custom_call.1
= control target key start
LH: loop header
LB: loop body
LE: loop exit
PB: predicated region body
PF: predicated region fallthrough
CT: control target
= control target key end

     0   :  { %8 = vsyncpa [#allocation3], 0  ;;  %s818_s0 = inlined_call_operand.hbm [shape: f32[2,32,256], index: 0, kind: input, shape index: {}]   ;;  %s819_s1 = inlined_call_operand.hbm [shape: f32[32,2], index: 1, kind: input, shape index: {}]   ;;  %s820_s2 = inlined_call_operand.hbm [shape: f32[2,32], index: 2, kind: input, shape index: {}]   ;;  %s821_s3 = inlined_call_operand.hbm [shape: f32[2,32,256], index: 3, kind: output, shape index: {}]  }
   0x1   :  { %9 = vsyncpa [#allocation6], 0 }
   0x2   :  { %10 = vsyncpa [#allocation4], 0  ;;  %s631_s12 = smov [#allocation5]   ;;  %s537_s16 = scalar_lea.hbm %s819_s1, 512 }
   0x3   :  { %s28_s13 = sshll.u32 %s631_s12, 4  ;;  %p538_p0 = scmp.ne.s32.totalorder %s819_s1, %s537_s16  ;;  %s29_s13 = int_to_ptr.vmem [resolvable:$true] %s28_s13 }
   0x4   :  { %p541_p1 = scmp.lt.u32.totalorder %s537_s16, %s819_s1 }
   0x6   :  { %p543_p2 = pnand %p541_p1, %p538_p0 }
   0x8   :  { %546 = shalt.err (!%p543_p2)
}
   0x9   :  { %s547_s21 = scalar_lea.vmem %s29_s13, 512  ;;  %p552_p4 = scmp.lt.s32.totalorder %s29_s13, %s29_s13 }
   0xa   :  { %p548_p3 = scmp.ne.s32.totalorder %s29_s13, %s547_s21  ;;  %p553_p5 = scmp.lt.s32.totalorder %s547_s21, %s547_s21 }
   0xc   :  { %p554_p6 = por %p553_p5, %p552_p4 }
   0xe   :  { %p555_p7 = pnand %p554_p6, %p548_p3 }
  0x10   :  { %558 = shalt.err (!%p555_p7)
}
  0x11   :  { %s632_s22 = smov 128   ;;  %s633_s23 = smov 8  }
  0x12   :  { %34 = dma.hbm_to_vmem [thread:$0]  %s819_s1, 512, %s29_s13, [#allocation6], %s632_s22, %s632_s22, %s633_s23  }
  0x13   :  { %s634_s26 = smov [#allocation2]   ;;  %s559_s30 = scalar_lea.hbm %s818_s0, 2048 }
  0x14   :  { %s16_s27 = sshll.u32 %s634_s26, 4  ;;  %p560_p8 = scmp.ne.s32.totalorder %s818_s0, %s559_s30  ;;  %s17_s27 = int_to_ptr.vmem [resolvable:$true] %s16_s27 }
  0x15   :  { %p563_p9 = scmp.lt.u32.totalorder %s559_s30, %s818_s0 }
  0x17   :  { %p565_p10 = pnand %p563_p9, %p560_p8 }
  0x19   :  { %568 = shalt.err (!%p565_p10)
}
  0x1a   :  { %s569_s8 = scalar_lea.vmem %s17_s27, 2048  ;;  %p574_p12 = scmp.lt.s32.totalorder %s17_s27, %s17_s27 }
  0x1b   :  { %p570_p11 = scmp.ne.s32.totalorder %s17_s27, %s569_s8  ;;  %p575_p13 = scmp.lt.s32.totalorder %s569_s8, %s569_s8 }
  0x1d   :  { %p576_p0 = por %p575_p13, %p574_p12 }
  0x1f   :  { %p577_p1 = pnand %p576_p0, %p570_p11 }
  0x21   :  { %580 = shalt.err (!%p577_p1)
}
  0x22   :  { %s635_s1 = smov 256   ;;  %s636_s9 = smov 16  }
  0x23   :  { %22 = dma.hbm_to_vmem [thread:$0]  %s818_s0, 2048, %s17_s27, [#allocation3], %s635_s1, %s635_s1, %s636_s9  }
  0x24   :  { %s637_s12 = smov [#allocation7]   ;;  %s581_s16 = scalar_lea.hbm %s820_s2, 32 }
  0x25   :  { %s41_s13 = sshll.u32 %s637_s12, 4  ;;  %p582_p2 = scmp.ne.s32.totalorder %s820_s2, %s581_s16  ;;  %s42_s13 = int_to_ptr.vmem [resolvable:$true] %s41_s13 }
  0x26   :  { %p585_p3 = scmp.lt.u32.totalorder %s581_s16, %s820_s2 }
  0x28   :  { %p587_p4 = pnand %p585_p3, %p582_p2 }
  0x2a   :  { %590 = shalt.err (!%p587_p4)
}
  0x2b   :  { %s591_s21 = scalar_lea.vmem %s42_s13, 32  ;;  %p596_p6 = scmp.lt.s32.totalorder %s42_s13, %s42_s13 }
  0x2c   :  { %p592_p5 = scmp.ne.s32.totalorder %s42_s13, %s591_s21  ;;  %p597_p7 = scmp.lt.s32.totalorder %s591_s21, %s591_s21 }
  0x2e   :  { %p598_p8 = por %p597_p7, %p596_p6 }
  0x30   :  { %p599_p9 = pnand %p598_p8, %p592_p5 }
  0x32   :  { %602 = shalt.err (!%p599_p9)
}
  0x33   :  { %44 = dma.hbm_to_vmem [thread:$0]  %s820_s2, 32, %s42_s13, [#allocation6]  }
  0x34   :  { %625 = dma.done.wait [#allocation3], 2048  }
  0x35   :  { %626 = vsyncadd [#allocation3], 4294965248 }
  0x36   :  { %627 = dma.done.wait [#allocation6], 544  }
  0x37   :  { %628 = vsyncadd [#allocation6], 4294966752  ;;  %v701_v0 = vld [vmem:[#allocation2 + $0x40] sm:$0xff]  ;;  %v703_v1 = vld [vmem:[#allocation2 + $0x48] sm:$0xff]  ;;  %v638_v35 = vmov 0.0|0.0   ;;  %vm639_vm0 = vmmov 0   ;;  %v134_v45 = vlaneseq }
  0x38   :  { %v705_v2 = vld [vmem:[#allocation2] sm:$0xff]  ;;  %v82_v3 = vadd.f32 %v703_v1, %v701_v0  ;;  %v709_v4 = vld [vmem:[#allocation2 + $0x8] sm:$0xff]  ;;  %v711_v5 = vld [vmem:[#allocation2 + $0x50] sm:$0xff]  ;;  %v106_v27 = vmax.f32 %v701_v0, %v703_v1  ;;  %516 = vmatprep.subr.bf16.mxu0 %v638_v35  ;;  %v640_v39 = vmov 0.0   ;;  %vm145_vm1 = vcmask 130112   ;;  %s641_s2 = smov [#allocation8]  }
  0x39   :  { %v713_v6 = vld [vmem:[#allocation2 + $0x58] sm:$0xff]  ;;  %v70_v7 = vadd.f32 %v709_v4, %v705_v2  ;;  %v717_v8 = vld [vmem:[#allocation2 + $0x10] sm:$0xff]  ;;  %v725_v12 = vld [vmem:[#allocation2 + $0x60] sm:$0xff]  ;;  %v94_v25 = vmax.f32 %v705_v2, %v709_v4  ;;  %508 = vmatprep.mubr.msk.f32.mxu0 %vm639_vm0, %v640_v39  ;;  %511 = vmatprep.subr.mxu1 %v640_v39  ;;  %v135_v48 = vand.u32 127, %v134_v45  ;;  %v765_v50 = vshrl.u32 %v134_v45, 7  ;;  %s476_s23 = sshll.u32 %s641_s2, 4  ;;  %s477_s23 = int_to_ptr.vmem [resolvable:$true] %s476_s23 }
  0x3a   :  { %v719_v9 = vld [vmem:[#allocation2 + $0x18] sm:$0xff]  ;;  %83 = vadd.xlane.f32.xlu1 %v82_v3  ;;  %v85_v10 = vadd.f32 %v713_v6, %v711_v5  ;;  %v727_v13 = vld [vmem:[#allocation2 + $0x68] sm:$0xff]  ;;  %v729_v14 = vld [vmem:[#allocation2 + $0x20] sm:$0xff]  ;;  %v109_v26 = vmax.f32 %v711_v5, %v713_v6  ;;  %513 = vmatprep.mubr.msk.f32.mxu1 %vm639_vm0, %v640_v39  ;;  %vm152_vm2 = vcmask 195712   ;;  %vm159_vm3 = vcmask 261312   ;;  %s603_s24 = scalar_lea.vmem %s477_s23, 2048  ;;  %p608_p11 = scmp.lt.s32.totalorder %s477_s23, %s477_s23 }
  0x3b   :  { %71 = vadd.xlane.f32.xlu0 %v70_v7  ;;  %v73_v11 = vadd.f32 %v719_v9, %v717_v8  ;;  %v731_v15 = vld [vmem:[#allocation2 + $0x28] sm:$0xff]  ;;  %v88_v16 = vadd.f32 %v727_v13, %v725_v12  ;;  %v737_v18 = vld [vmem:[#allocation2 + $0x70] sm:$0xff]  ;;  %v739_v19 = vld [vmem:[#allocation2 + $0x78] sm:$0xff]  ;;  %v97_v24 = vmax.f32 %v717_v8, %v719_v9  ;;  %v112_v28 = vmax.f32 %v725_v12, %v727_v13  ;;  %p604_p10 = scmp.ne.s32.totalorder %s477_s23, %s603_s24  ;;  %p609_p12 = scmp.lt.s32.totalorder %s603_s24, %s603_s24 }
  0x3c   :  { %v76_v17 = vadd.f32 %v731_v15, %v729_v14  ;;  %v741_v20 = vld [vmem:[#allocation2 + $0x30] sm:$0xff]  ;;  %v743_v21 = vld [vmem:[#allocation2 + $0x38] sm:$0xff]  ;;  %v91_v22 = vadd.f32 %v739_v19, %v737_v18  ;;  %v100_v29 = vmax.f32 %v729_v14, %v731_v15  ;;  %v115_v30 = vmax.f32 %v737_v18, %v739_v19  ;;  %v234_v32 = vld [vmem:[#allocation5] sm:$0xff] }
  0x3d   :  { %v79_v23 = vadd.f32 %v743_v21, %v741_v20  ;;  %v103_v31 = vmax.f32 %v741_v20, %v743_v21  ;;  %v235_v33 = vld [vmem:[#allocation5 + $0x8] sm:$0xff]  ;;  %v236_v36 = vld [vmem:[#allocation5 + $0x10] sm:$0xff]  ;;  %v237_v37 = vld [vmem:[#allocation5 + $0x18] sm:$0xff]  ;;  %v140_v51 = vadd.s32 4294967288, %v135_v48  ;;  %v147_v52 = vadd.s32 4294967280, %v135_v48  ;;  %p610_p13 = por %p609_p12, %p608_p11 }
  0x3e   :  { %86 = vadd.xlane.f32.xlu1 %v85_v10  ;;  %v517_v34 = vpack.c.bf16 %v235_v33, %v234_v32  ;;  %v520_v38 = vpack.c.bf16 %v237_v37, %v236_v36  ;;  %v154_v54 = vadd.s32 4294967272, %v135_v48  ;;  %v138_v56 = vsub.s32 %v135_v48, %v765_v50 }
  0x3f   :  { %74 = vadd.xlane.f32.xlu0 %v73_v11  ;;  %v143_v57 = vsub.s32 %v140_v51, %v765_v50  ;;  %v150_v59 = vsub.s32 %v147_v52, %v765_v50  ;;  %vm180_vm4 = vcmask 1041409   ;;  %vm229_vm5 = vcmask 1043459   ;;  %p611_p0 = pnand %p610_p13, %p604_p10 }
  0x40   :  { %518 = vmatpush3.bf16.msra.mxu0 %v517_v34  ;;  %v157_v10 = vsub.s32 %v154_v54, %v765_v50  ;;  %vm232_vm6 = vcmask 1041408   ;;  %vm238_vm7 = vcmask 261120   ;;  %vm314_vm8 = vcmask 15360  }
  0x41   :  { %519 = vmatprep.subr.bf16.mxu0 %v638_v35 }
  0x42   :  { %89 = vadd.xlane.f32.xlu1 %v88_v16 }
  0x43   :  { %77 = vadd.xlane.f32.xlu0 %v76_v17 }
  0x44   :  { %521 = vmatpush3.bf16.msra.mxu0 %v520_v38 }
  0x46   :  { %92 = vadd.xlane.f32.xlu1 %v91_v22 }
  0x47   :  { %80 = vadd.xlane.f32.xlu0 %v79_v23 }
  0x4a   :  { %98 = vmax.xlane.f32.xlu1 %v97_v24 }
  0x4b   :  { %95 = vmax.xlane.f32.xlu0 %v94_v25 }
  0x4e   :  { %110 = vmax.xlane.f32.xlu1 %v109_v26 }
  0x4f   :  { %107 = vmax.xlane.f32.xlu0 %v106_v27 }
  0x52   :  { %113 = vmax.xlane.f32.xlu1 %v112_v28 }
  0x53   :  { %101 = vmax.xlane.f32.xlu0 %v100_v29 }
  0x56   :  { %116 = vmax.xlane.f32.xlu1 %v115_v30 }
  0x57   :  { %104 = vmax.xlane.f32.xlu0 %v103_v31 }
  0xc7   :  { %v84_v40 = vpop.xlane.xlu1 %83 }
  0xc8   :  { %v72_v41 = vpop.xlane.xlu0 %71  ;;  %v122_v60 = vmul.f32 0.00390625, %v84_v40 }
  0xc9   :  { %v118_v61 = vmul.f32 0.00390625, %v72_v41 }
  0xca   :  { %v164_v23 = vrot.slane %v122_v60, %v138_v56 }
  0xcb   :  { %v87_v42 = vpop.xlane.xlu1 %86  ;;  %v139_v24 = vrot.slane %v118_v61, %v138_v56 }
  0xcc   :  { %v75_v43 = vpop.xlane.xlu0 %74  ;;  %v123_v58 = vmul.f32 0.00390625, %v87_v42 }
  0xcd   :  { %v119_v62 = vmul.f32 0.00390625, %v75_v43 }
  0xce   :  { %v168_v22 = vrot.slane %v123_v58, %v143_v57  ;;  %v313_v58 = vld [vmem:[#allocation7] sm:$0x3] }
  0xcf   :  { %v90_v44 = vpop.xlane.xlu1 %89  ;;  %v144_v25 = vrot.slane %v119_v62, %v143_v57  ;;  %512 = vmatpush3.msk.msra.mxu1 %vm232_vm6, %v313_v58 }
  0xd0   :  { %v78_v46 = vpop.xlane.xlu0 %77  ;;  %v124_v63 = vmul.f32 0.00390625, %v90_v44  ;;  %v169_v37 = vsel %vm145_vm1, %v168_v22, %v164_v23 }
  0xd1   :  { %v120_v7 = vmul.f32 0.00390625, %v78_v46  ;;  %v146_v39 = vsel %vm145_vm1, %v144_v25, %v139_v24  ;;  %v422_v24 = vsub.s32 1, %v765_v50 }
  0xd2   :  { %v173_v26 = vrot.slane %v124_v63, %v150_v59 }
  0xd3   :  { %v93_v47 = vpop.xlane.xlu1 %92  ;;  %v151_v28 = vrot.slane %v120_v7, %v150_v59 }
  0xd4   :  { %v81_v49 = vpop.xlane.xlu0 %80  ;;  %v125_v11 = vmul.f32 0.00390625, %v93_v47  ;;  %v174_v40 = vsel %vm152_vm2, %v173_v26, %v169_v37 }
  0xd5   :  { %v121_v17 = vmul.f32 0.00390625, %v81_v49  ;;  %v153_v42 = vsel %vm152_vm2, %v151_v28, %v146_v39 }
  0xd6   :  { %v178_v29 = vrot.slane %v125_v11, %v157_v10 }
  0xd7   :  { %v99_v53 = vpop.xlane.xlu1 %98  ;;  %v158_v33 = vrot.slane %v121_v17, %v157_v10  ;;  %v403_v17 = vsub.s32 0, %v765_v50 }
  0xd8   :  { %v96_v55 = vpop.xlane.xlu0 %95  ;;  %v198_v34 = vrot.slane %v99_v53, %v143_v57  ;;  %v179_v43 = vsel %vm159_vm3, %v178_v29, %v174_v40 }
  0xd9   :  { %v194_v35 = vrot.slane %v96_v55, %v138_v56  ;;  %v160_v47 = vsel %vm159_vm3, %v158_v33, %v153_v42 }
  0xda   :  { %v181_v55 = vsel %vm180_vm4, %v179_v43, %v160_v47 }
  0xdb   :  { %v111_v3 = vpop.xlane.xlu1 %110  ;;  %v199_v48 = vsel %vm145_vm1, %v198_v34, %v194_v35 }
  0xdc   :  { %v108_v16 = vpop.xlane.xlu0 %107  ;;  %v217_v30 = vrot.slane %v111_v3, %v143_v57 }
  0xdd   :  { %v213_v31 = vrot.slane %v108_v16, %v138_v56 }
  0xdf   :  { %v114_v27 = vpop.xlane.xlu1 %113  ;;  %v218_v44 = vsel %vm145_vm1, %v217_v30, %v213_v31 }
  0xe0   :  { %v102_v32 = vpop.xlane.xlu0 %101  ;;  %v222_v36 = vrot.slane %v114_v27, %v150_v59 }
  0xe1   :  { %v203_v38 = vrot.slane %v102_v32, %v150_v59 }
  0xe2   :  { %v223_v49 = vsel %vm152_vm2, %v222_v36, %v218_v44 }
  0xe3   :  { %v117_v41 = vpop.xlane.xlu1 %116  ;;  %v204_v52 = vsel %vm152_vm2, %v203_v38, %v199_v48 }
  0xe4   :  { %v227_v45 = vrot.slane %v117_v41, %v157_v10  ;;  %v105_v46 = vpop.xlane.xlu0 %104 }
  0xe5   :  { %v208_v51 = vrot.slane %v105_v46, %v157_v10 }
  0xe6   :  { %v228_v53 = vsel %vm159_vm3, %v227_v45, %v223_v49 }
  0xe7   :  { %v209_v54 = vsel %vm159_vm3, %v208_v51, %v204_v52 }
  0xe8   :  { %v230_v56 = vsel %vm229_vm5, %v228_v53, %v209_v54 }
  0xe9   :  { %v233_v57 = vsel %vm232_vm6, %v181_v55, %v230_v56 }
  0xea   :  { %509 = vmatmul.mubr.msk.f32.vlgmr.msra.gmra.mrb[0].mxu0 %vm238_vm7, %v233_v57 }
 0x1bd   :  { %v308_v59 = vpop.f32.mrb[0].mxu0 }
 0x1be   :  { %v312_v60 = vmax.f32 %v308_v59, 0.0  ;;  %v510_v61 = vpop.f32.mrb[1].mxu0 }
 0x1c0   :  { %514 = vmatmul.mubr.msk.f32.vlgmr.msra.gmra.mrb[0].mxu1 %vm314_vm8, %v312_v60 }
 0x293   :  { %v387_v62 = vpop.f32.mrb[0].mxu1 }
 0x294   :  { %v392_v63 = vrot.slane %v387_v62, 2  ;;  %v515_v3 = vpop.f32.mrb[1].mxu1 }
 0x296   :  { %v394_v7 = vadd.f32 %v392_v63, %v387_v62 }
 0x298   :  { %v492_v10 = vmul.f32 -1.442695, %v394_v7 }
 0x29a   :  { %533 = vpow2.f32 %v492_v10 }
 0x2a4   :  { %v534_v11 = vpop.eup %533 }
 0x2a5   :  { %v398_v16 = vadd.f32 1.0, %v534_v11 }
 0x2a7   :  { %535 = vrcp.f32 %v398_v16 }
 0x2b1   :  { %v536_v22 = vpop.eup %535 }
 0x2b2   :  { %v404_v23 = vrot.slane %v536_v22, %v403_v17  ;;  %v423_v25 = vrot.slane %v536_v22, %v422_v24 }
 0x2b4   :  { %410 = vbcast.lane.b32.xlu1 %v404_v23, 264  ;;  %406 = vbcast.lane.b32.xlu0 %v404_v23, 256 }
 0x2b8   :  { %414 = vbcast.lane.b32.xlu1 %v404_v23, 272  ;;  %425 = vbcast.lane.b32.xlu0 %v423_v25, 256 }
 0x2bc   :  { %418 = vbcast.lane.b32.xlu1 %v404_v23, 280  ;;  %433 = vbcast.lane.b32.xlu0 %v423_v25, 272 }
 0x2c0   :  { %429 = vbcast.lane.b32.xlu1 %v423_v25, 264 }
 0x2c4   :  { %437 = vbcast.lane.b32.xlu1 %v423_v25, 280 }
 0x326   :  { %v411_v26 = vpop.permute.xlu1 %410  ;;  %v407_v27 = vpop.permute.xlu0 %406 }
 0x327   :  { %v441_v28 = vmul.f32 %v411_v26, %v717_v8  ;;  %v442_v29 = vmul.f32 %v411_v26, %v719_v9  ;;  %v439_v30 = vmul.f32 %v407_v27, %v705_v2  ;;  %v440_v31 = vmul.f32 %v407_v27, %v709_v4 }
 0x329   :  { %457 = vst [vmem:[#allocation8 + $0x10] sm:$0xff] %v441_v28  ;;  %458 = vst [vmem:[#allocation8 + $0x18] sm:$0xff] %v442_v29 }
 0x32a   :  { %455 = vst [vmem:[#allocation8] sm:$0xff] %v439_v30  ;;  %456 = vst [vmem:[#allocation8 + $0x8] sm:$0xff] %v440_v31  ;;  %v415_v50 = vpop.permute.xlu1 %414  ;;  %v426_v32 = vpop.permute.xlu0 %425 }
 0x32b   :  { %v443_v33 = vmul.f32 %v415_v50, %v729_v14  ;;  %v444_v34 = vmul.f32 %v415_v50, %v731_v15  ;;  %v447_v35 = vmul.f32 %v426_v32, %v701_v0  ;;  %v448_v8 = vmul.f32 %v426_v32, %v703_v1 }
 0x32d   :  { %459 = vst [vmem:[#allocation8 + $0x20] sm:$0xff] %v443_v33  ;;  %460 = vst [vmem:[#allocation8 + $0x28] sm:$0xff] %v444_v34 }
 0x32e   :  { %463 = vst [vmem:[#allocation8 + $0x40] sm:$0xff] %v447_v35  ;;  %464 = vst [vmem:[#allocation8 + $0x48] sm:$0xff] %v448_v8  ;;  %v419_v2 = vpop.permute.xlu1 %418  ;;  %v434_v4 = vpop.permute.xlu0 %433 }
 0x32f   :  { %v445_v9 = vmul.f32 %v419_v2, %v741_v20  ;;  %v446_v36 = vmul.f32 %v419_v2, %v743_v21  ;;  %v451_v37 = vmul.f32 %v434_v4, %v725_v12  ;;  %v452_v14 = vmul.f32 %v434_v4, %v727_v13 }
 0x331   :  { %461 = vst [vmem:[#allocation8 + $0x30] sm:$0xff] %v445_v9  ;;  %462 = vst [vmem:[#allocation8 + $0x38] sm:$0xff] %v446_v36 }
 0x332   :  { %467 = vst [vmem:[#allocation8 + $0x60] sm:$0xff] %v451_v37  ;;  %468 = vst [vmem:[#allocation8 + $0x68] sm:$0xff] %v452_v14  ;;  %v430_v0 = vpop.permute.xlu1 %429 }
 0x333   :  { %v449_v1 = vmul.f32 %v430_v0, %v711_v5  ;;  %v450_v15 = vmul.f32 %v430_v0, %v713_v6 }
 0x335   :  { %465 = vst [vmem:[#allocation8 + $0x50] sm:$0xff] %v449_v1  ;;  %466 = vst [vmem:[#allocation8 + $0x58] sm:$0xff] %v450_v15 }
 0x336   :  { %v438_v20 = vpop.permute.xlu1 %437 }
 0x337   :  { %v453_v21 = vmul.f32 %v438_v20, %v737_v18  ;;  %v454_v12 = vmul.f32 %v438_v20, %v739_v19 }
 0x339   :  { %469 = vst [vmem:[#allocation8 + $0x70] sm:$0xff] %v453_v21  ;;  %470 = vst [vmem:[#allocation8 + $0x78] sm:$0xff] %v454_v12 }
 0x33a   :  { %614 = shalt.err (!%p611_p0)
}
 0x33b   :  { %s615_s27 = scalar_lea.hbm %s821_s3, 2048 }
 0x33c   :  { %p616_p1 = scmp.ne.s32.totalorder %s821_s3, %s615_s27  ;;  %p619_p2 = scmp.lt.u32.totalorder %s615_s27, %s821_s3 }
 0x33e   :  { %p621_p3 = pnand %p619_p2, %p616_p1 }
 0x340   :  { %624 = shalt.err (!%p621_p3)
}
 0x341   :  { %482 = dma.vmem_to_hbm [thread:$0]  %s477_s23, 2048, %s821_s3, [#allocation4], %s635_s1, %s635_s1, %s636_s9  }
 0x342   :  { %629 = dma.done.wait [#allocation4], 2048  }
 0x343   :  { %630 = vsyncadd [#allocation4], 4294965248 }
 0x344   :  { %486 = vsyncpa [#allocation3], 1 }
 0x345   :  { %487 = vsyncpa [#allocation6], 1 }
 0x346   :  { %488 = vsyncpa [#allocation4], 1 }

</bundles_post_ra>
